<compile_context>
chip_gen: v7x
topology: tpu7x:2x2x1
jax: 0.10.0
libtpu: 0.0.40
codegen_flags: <defaults>
</compile_context>

<pallas_src>
import jax
import jax.numpy as jnp
from jax.experimental import pallas as pl
from jax.experimental.pallas import tpu as pltpu


def _leaky_relu(z):
    # torch.nn.functional.leaky_relu default negative_slope = 0.01
    return jnp.where(z > 0, z, 0.01 * z)


def _round_up(x, m):
    return ((x + m - 1) // m) * m


def dueling_dqn_kernel(obs_ref, emb1_ref, wh_ref, bh_ref, wq_ref, bq_ref, q_ref):
    obs = obs_ref[...]                                    # (TB, 1) int32
    tb = obs.shape[0]
    s_pad = emb1_ref.shape[0]

    # Fused embedding gather as a one-hot matmul (MXU), with fc1 + b1 already
    # folded into emb1: h = leaky_relu(emb[obs] @ W1 + b1).
    lane_ids = jax.lax.broadcasted_iota(jnp.int32, (tb, s_pad), 1)
    onehot = (lane_ids == obs).astype(jnp.float32)        # (TB, S_pad)
    h = _leaky_relu(
        jnp.dot(onehot, emb1_ref[...], preferred_element_type=jnp.float32))

    # Packed hidden branches: [hv | ha] in one matmul.
    h2 = _leaky_relu(
        jnp.dot(h, wh_ref[...], preferred_element_type=jnp.float32) + bh_ref[...])

    # Packed head with value + advantage - mean(adv) folded into the weights.
    q_ref[...] = (
        jnp.dot(h2, wq_ref[...], preferred_element_type=jnp.float32) + bq_ref[...])


def pack_params(params, lane_pad=128):
    """Fold / pack torch-layout params into kernel-ready tensors (done once)."""
    S = params["emb"].shape[0]
    n0 = params["w1"].shape[1]
    n1 = params["whv"].shape[1]
    A = params["wza"].shape[1]
    s_pad = _round_up(S, lane_pad)

    # emb1[s] = emb[s] @ W1 + b1   (fc1 + bias folded into the table)
    emb1 = params["emb"] @ params["w1"] + params["b1"]            # (S, n0)
    emb1 = jnp.pad(emb1, ((0, s_pad - S), (0, 0)))                # (S_pad, n0)

    wh = jnp.concatenate([params["whv"], params["wha"]], axis=1)  # (n0, 2*n1)
    bh = jnp.concatenate([params["bhv"], params["bha"]], axis=1)  # (1, 2*n1)

    # Q = hv @ Wzv + bzv + ha @ Wza + bza - mean_j(ha @ Wza[:, j] + bza[j])
    #   = [hv | ha] @ Wq + bq   (exact, linearity)
    wza_centered = params["wza"] - jnp.mean(params["wza"], axis=1, keepdims=True)
    wq = jnp.concatenate(
        [jnp.broadcast_to(params["wzv"], (n1, A)), wza_centered], axis=0)  # (2*n1, A)
    bq = params["bzv"] + params["bza"] - jnp.mean(params["bza"], axis=1,
                                                  keepdims=True)           # (1, A)

    return {"emb1": emb1, "wh": wh, "bh": bh, "wq": wq, "bq": bq}


def bl_dueling_dqn_forward(obs, packed, visits, *, tile_b=256):
    # torch: `self.visits[obs] += 1e-05` (index_put_, accumulate=False):
    # duplicates get the increment once per unique index.
    visits = visits.at[obs].set(visits[obs] + 1e-5)

    B = obs.shape[0]
    s_pad, n0 = packed["emb1"].shape
    two_n1 = packed["wh"].shape[1]
    A = packed["wq"].shape[1]

    tile = min(tile_b, _round_up(B, 8))      # sublane-aligned batch tile
    b_pad = _round_up(B, tile)
    obs2 = jnp.pad(obs.astype(jnp.int32), (0, b_pad - B)).reshape(b_pad, 1)

    q = pl.pallas_call(
        dueling_dqn_kernel,
        out_shape=jax.ShapeDtypeStruct((b_pad, A), jnp.float32),
        grid_spec=pltpu.PrefetchScalarGridSpec(
            num_scalar_prefetch=0,
            grid=(b_pad // tile,),
            in_specs=[
                pl.BlockSpec((tile, 1), lambda i: (i, 0)),        # obs
                pl.BlockSpec((s_pad, n0), lambda i: (0, 0)),      # emb1 (resident)
                pl.BlockSpec((n0, two_n1), lambda i: (0, 0)),     # Wh
                pl.BlockSpec((1, two_n1), lambda i: (0, 0)),      # bh
                pl.BlockSpec((two_n1, A), lambda i: (0, 0)),      # Wq
                pl.BlockSpec((1, A), lambda i: (0, 0)),           # bq
            ],
            out_specs=pl.BlockSpec((tile, A), lambda i: (i, 0)),
        ),
        compiler_params=pltpu.CompilerParams(
            dimension_semantics=("parallel",)),
    )(obs2, packed["emb1"], packed["wh"], packed["bh"],
      packed["wq"], packed["bq"])

    if b_pad != B:
        q = q[:B]
    state = None
    return q, state, visits


def init_params(key, state_shape, action_shape, number_of_nodes):
    n0, n1 = number_of_nodes
    ks = jax.random.split(key, 11)

    def lin(kw, kb, fan_in, fan_out):
        bound = 1.0 / jnp.sqrt(jnp.float32(fan_in))
        w = jax.random.uniform(kw, (fan_in, fan_out), jnp.float32, -bound, bound)
        b = jax.random.uniform(kb, (1, fan_out), jnp.float32, -bound, bound)
        return w, b

    params = {}
    params["emb"] = jax.random.normal(ks[0], (state_shape, 4), jnp.float32)
    params["w1"], params["b1"] = lin(ks[1], ks[2], 4, n0)
    params["whv"], params["bhv"] = lin(ks[3], ks[4], n0, n1)
    params["wha"], params["bha"] = lin(ks[5], ks[6], n0, n1)
    params["wzv"], params["bzv"] = lin(ks[7], ks[8], n1, 1)
    params["wza"], params["bza"] = lin(ks[9], ks[10], n1, action_shape)
    return params


def _reference_forward(obs, params):
    # Pure-JAX reference of the torch forward (explain=False path), unpacked.
    x = jnp.take(params["emb"], obs, axis=0)
    h = _leaky_relu(x @ params["w1"] + params["b1"])
    hv = _leaky_relu(h @ params["whv"] + params["bhv"])
    ha = _leaky_relu(h @ params["wha"] + params["bha"])
    value = hv @ params["wzv"] + params["bzv"]
    adv = ha @ params["wza"] + params["bza"]
    return value + adv - jnp.mean(adv, axis=1, keepdims=True)


if __name__ == "__main__":
    # Taxi-like config, kept small: 500 states, 6 actions, hidden [32, 32].
    STATE_SHAPE = 500
    ACTION_SHAPE = 6
    NODES = (32, 32)
    BATCH = 8

    key = jax.random.PRNGKey(0)
    k_params, k_obs = jax.random.split(key)

    params = init_params(k_params, STATE_SHAPE, ACTION_SHAPE, NODES)
    packed = pack_params(params)
    obs = jax.random.randint(k_obs, (BATCH,), 0, STATE_SHAPE, dtype=jnp.int32)
    visits = jnp.zeros((STATE_SHAPE,), jnp.float32)

    q, state, visits = bl_dueling_dqn_forward(obs, packed, visits)
    q = jax.block_until_ready(q)

    q_ref = _reference_forward(obs, params)
    assert q.shape == (BATCH, ACTION_SHAPE)
    assert jnp.allclose(q, q_ref, atol=1e-4, rtol=1e-4), (
        float(jnp.max(jnp.abs(q - q_ref))))

    print("KERNEL_OK")
</pallas_src>

<mosaic_0001>
module attributes {stable_mosaic.version = 11 : i64} {
  func.func @dueling_dqn_kernel(%arg0: i32, %arg1: memref<8x1xi32, #tpu.memory_space<vmem>>, %arg2: memref<512x32xf32, #tpu.memory_space<vmem>>, %arg3: memref<32x64xf32, #tpu.memory_space<vmem>>, %arg4: memref<1x64xf32, #tpu.memory_space<vmem>>, %arg5: memref<64x6xf32, #tpu.memory_space<vmem>>, %arg6: memref<1x6xf32, #tpu.memory_space<vmem>>, %arg7: memref<8x6xf32, #tpu.memory_space<vmem>>) attributes {dimension_semantics = [#tpu.dimension_semantics<parallel>], iteration_bounds = array<i64: 1>, scalar_prefetch = 0 : i64, scratch_operands = 0 : i64, tpu.core_type = #tpu.core_type<tc>, window_params = [{transform_indices = @transform_0, window_bounds = array<i64: 8, 1>}, {pipeline_mode = #tpu.pipeline_mode<synchronous>, transform_indices = @transform_1, window_bounds = array<i64: 512, 32>}, {pipeline_mode = #tpu.pipeline_mode<synchronous>, transform_indices = @transform_2, window_bounds = array<i64: 32, 64>}, {pipeline_mode = #tpu.pipeline_mode<synchronous>, transform_indices = @transform_3, window_bounds = array<i64: 1, 64>}, {pipeline_mode = #tpu.pipeline_mode<synchronous>, transform_indices = @transform_4, window_bounds = array<i64: 64, 6>}, {pipeline_mode = #tpu.pipeline_mode<synchronous>, transform_indices = @transform_5, window_bounds = array<i64: 1, 6>}, {transform_indices = @transform_6, window_bounds = array<i64: 8, 6>}]} {
    %c0 = arith.constant 0 : index
    %c0_0 = arith.constant 0 : index
    %0 = vector.load %arg1[%c0, %c0_0] : memref<8x1xi32, #tpu.memory_space<vmem>>, vector<8x1xi32>
    %1 = tpu.iota {dimensions = array<i32: 1>} : vector<8x512xi32>
    %2 = vector.broadcast %0 : vector<8x1xi32> to vector<8x512xi32>
    %3 = arith.cmpi eq, %1, %2 : vector<8x512xi32>
    %4 = arith.extui %3 : vector<8x512xi1> to vector<8x512xi32>
    %5 = arith.sitofp %4 : vector<8x512xi32> to vector<8x512xf32>
    %c0_1 = arith.constant 0 : index
    %c0_2 = arith.constant 0 : index
    %6 = vector.load %arg2[%c0_1, %c0_2] : memref<512x32xf32, #tpu.memory_space<vmem>>, vector<512x32xf32>
    %cst = arith.constant dense<0.000000e+00> : vector<8x32xf32>
    %7 = tpu.matmul %5, %6, %cst {dimension_numbers = #tpu.dot_dimension_numbers<[1], [0], [0], [1], [0, 0, 1, 1], [], []>} : vector<8x512xf32>, vector<512x32xf32>, vector<8x32xf32> -> vector<8x32xf32>
    %cst_3 = arith.constant 0.000000e+00 : f32
    %8 = vector.broadcast %cst_3 : f32 to vector<8x32xf32>
    %9 = arith.cmpf ogt, %7, %8 : vector<8x32xf32>
    %cst_4 = arith.constant 0.00999999977 : f32
    %10 = vector.broadcast %cst_4 : f32 to vector<8x32xf32>
    %11 = arith.mulf %10, %7 : vector<8x32xf32>
    %12 = arith.select %9, %7, %11 : vector<8x32xi1>, vector<8x32xf32>
    %c0_5 = arith.constant 0 : index
    %c0_6 = arith.constant 0 : index
    %13 = vector.load %arg3[%c0_5, %c0_6] : memref<32x64xf32, #tpu.memory_space<vmem>>, vector<32x64xf32>
    %cst_7 = arith.constant dense<0.000000e+00> : vector<8x64xf32>
    %14 = tpu.matmul %12, %13, %cst_7 {dimension_numbers = #tpu.dot_dimension_numbers<[1], [0], [0], [1], [0, 0, 1, 1], [], []>} : vector<8x32xf32>, vector<32x64xf32>, vector<8x64xf32> -> vector<8x64xf32>
    %c0_8 = arith.constant 0 : index
    %c0_9 = arith.constant 0 : index
    %15 = vector.load %arg4[%c0_8, %c0_9] : memref<1x64xf32, #tpu.memory_space<vmem>>, vector<1x64xf32>
    %16 = vector.broadcast %15 : vector<1x64xf32> to vector<8x64xf32>
    %17 = arith.addf %14, %16 : vector<8x64xf32>
    %cst_10 = arith.constant 0.000000e+00 : f32
    %18 = vector.broadcast %cst_10 : f32 to vector<8x64xf32>
    %19 = arith.cmpf ogt, %17, %18 : vector<8x64xf32>
    %cst_11 = arith.constant 0.00999999977 : f32
    %20 = vector.broadcast %cst_11 : f32 to vector<8x64xf32>
    %21 = arith.mulf %20, %17 : vector<8x64xf32>
    %22 = arith.select %19, %17, %21 : vector<8x64xi1>, vector<8x64xf32>
    %c0_12 = arith.constant 0 : index
    %c0_13 = arith.constant 0 : index
    %23 = vector.load %arg5[%c0_12, %c0_13] : memref<64x6xf32, #tpu.memory_space<vmem>>, vector<64x6xf32>
    %cst_14 = arith.constant dense<0.000000e+00> : vector<8x6xf32>
    %24 = tpu.matmul %22, %23, %cst_14 {dimension_numbers = #tpu.dot_dimension_numbers<[1], [0], [0], [1], [0, 0, 1, 1], [], []>} : vector<8x64xf32>, vector<64x6xf32>, vector<8x6xf32> -> vector<8x6xf32>
    %c0_15 = arith.constant 0 : index
    %c0_16 = arith.constant 0 : index
    %25 = vector.load %arg6[%c0_15, %c0_16] : memref<1x6xf32, #tpu.memory_space<vmem>>, vector<1x6xf32>
    %26 = vector.broadcast %25 : vector<1x6xf32> to vector<8x6xf32>
    %27 = arith.addf %24, %26 : vector<8x6xf32>
    %c0_17 = arith.constant 0 : index
    %c0_18 = arith.constant 0 : index
    %28 = vector.load %arg7[%c0_17, %c0_18] : memref<8x6xf32, #tpu.memory_space<vmem>>, vector<8x6xf32>
    tpu.vector_store %arg7[%c0_17, %c0_18], %27 {strides = array<i32>} : memref<8x6xf32, #tpu.memory_space<vmem>>, vector<8x6xf32>,
    return
  }
  func.func @transform_0(%arg0: i32) -> (i32, i32) {
    %c0_i32 = arith.constant 0 : i32
    %c0_i32_0 = arith.constant 0 : i32
    return %arg0, %c0_i32 : i32, i32
  }
  func.func @transform_1(%arg0: i32) -> (i32, i32) {
    %c0_i32 = arith.constant 0 : i32
    %c0_i32_0 = arith.constant 0 : i32
    %c0_i32_1 = arith.constant 0 : i32
    return %c0_i32, %c0_i32_0 : i32, i32
  }
  func.func @transform_2(%arg0: i32) -> (i32, i32) {
    %c0_i32 = arith.constant 0 : i32
    %c0_i32_0 = arith.constant 0 : i32
    %c0_i32_1 = arith.constant 0 : i32
    return %c0_i32, %c0_i32_0 : i32, i32
  }
  func.func @transform_3(%arg0: i32) -> (i32, i32) {
    %c0_i32 = arith.constant 0 : i32
    %c0_i32_0 = arith.constant 0 : i32
    %c0_i32_1 = arith.constant 0 : i32
    return %c0_i32, %c0_i32_0 : i32, i32
  }
  func.func @transform_4(%arg0: i32) -> (i32, i32) {
    %c0_i32 = arith.constant 0 : i32
    %c0_i32_0 = arith.constant 0 : i32
    %c0_i32_1 = arith.constant 0 : i32
    return %c0_i32, %c0_i32_0 : i32, i32
  }
  func.func @transform_5(%arg0: i32) -> (i32, i32) {
    %c0_i32 = arith.constant 0 : i32
    %c0_i32_0 = arith.constant 0 : i32
    %c0_i32_1 = arith.constant 0 : i32
    return %c0_i32, %c0_i32_0 : i32, i32
  }
  func.func @transform_6(%arg0: i32) -> (i32, i32) {
    %c0_i32 = arith.constant 0 : i32
    %c0_i32_0 = arith.constant 0 : i32
    return %arg0, %c0_i32 : i32, i32
  }
}

</mosaic_0001>

<bundles_post_ra>
// kernel: tpu_custom_call.1
= control target key start
LH: loop header
LB: loop body
LE: loop exit
PB: predicated region body
PF: predicated region fallthrough
CT: control target
= control target key end

     0   :  { %v684_v3 = vmov 0   ;;  %s974_s0 = inlined_call_operand.vmem [shape: s32[8,1], index: 0, kind: input, shape index: {}]   ;;  %s975_s1 = inlined_call_operand.vmem [shape: f32[512,32], index: 1, kind: input, shape index: {}]   ;;  %s976_s2 = inlined_call_operand.vmem [shape: f32[32,64], index: 2, kind: input, shape index: {}]   ;;  %s977_s3 = inlined_call_operand.vmem [shape: f32[1,64], index: 3, kind: input, shape index: {}]   ;;  %s978_s4 = inlined_call_operand.vmem [shape: f32[64,6], index: 4, kind: input, shape index: {}]   ;;  %s979_s5 = inlined_call_operand.vmem [shape: f32[1,6], index: 5, kind: input, shape index: {}]   ;;  %s980_s6 = inlined_call_operand.hbm [shape: f32[8,6], index: 6, kind: output, shape index: {}]  }
   0x1   :  { %v24_v0 = vld [vmem:[%s974_s0] sm:$0xff]  ;;  %v62_v2 = vld [vmem:[%s975_s1 + $0x88] sm:$0xff]  ;;  %659 = vset.pattern.permute.xlu0 %v684_v3  ;;  %v63_v14 = vld [vmem:[%s975_s1 + $0x90] sm:$0xff] }
   0x2   :  { %v61_v1 = vld [vmem:[%s975_s1 + $0x80] sm:$0xff]  ;;  %v94_v6 = vld [vmem:[%s975_s1 + $0x188] sm:$0xff]  ;;  %31 = vperm.xlu0 %659, %v24_v0   ;;  %v64_v15 = vld [vmem:[%s975_s1 + $0x98] sm:$0xff] }
   0x3   :  { %v571_v4 = vpack.c.bf16 %v62_v2, %v61_v1  ;;  %v93_v5 = vld [vmem:[%s975_s1 + $0x180] sm:$0xff]  ;;  %v46_v9 = vld [vmem:[%s975_s1 + $0x8] sm:$0xff]  ;;  %v95_v16 = vld [vmem:[%s975_s1 + $0x190] sm:$0xff]  ;;  %v575_v17 = vpack.c.bf16 %v64_v15, %v63_v14 }
   0x4   :  { %v45_v7 = vld [vmem:[%s975_s1] sm:$0xff]  ;;  %v603_v8 = vpack.c.bf16 %v94_v6, %v93_v5  ;;  %v78_v11 = vld [vmem:[%s975_s1 + $0x108] sm:$0xff]  ;;  %v96_v18 = vld [vmem:[%s975_s1 + $0x198] sm:$0xff] }
   0x5   :  { %v77_v10 = vld [vmem:[%s975_s1 + $0x100] sm:$0xff]  ;;  %572 = vmatprep.subr.bf16.mxu0 %v571_v4  ;;  %v573_v12 = vpack.c.bf16 %v46_v9, %v45_v7  ;;  %v47_v19 = vld [vmem:[%s975_s1 + $0x10] sm:$0xff]  ;;  %v48_v20 = vld [vmem:[%s975_s1 + $0x18] sm:$0xff]  ;;  %v607_v21 = vpack.c.bf16 %v96_v18, %v95_v16 }
   0x6   :  { %v605_v13 = vpack.c.bf16 %v78_v11, %v77_v10  ;;  %604 = vmatprep.subr.bf16.mxu1 %v603_v8  ;;  %v577_v22 = vpack.c.bf16 %v48_v20, %v47_v19  ;;  %v79_v23 = vld [vmem:[%s975_s1 + $0x110] sm:$0xff]  ;;  %v80_v24 = vld [vmem:[%s975_s1 + $0x118] sm:$0xff]  ;;  %v65_v25 = vld [vmem:[%s975_s1 + $0xa0] sm:$0xff] }
   0x7   :  { %574 = vmatpush3.bf16.msra.mxu0 %v573_v12  ;;  %v609_v26 = vpack.c.bf16 %v80_v24, %v79_v23  ;;  %v66_v27 = vld [vmem:[%s975_s1 + $0xa8] sm:$0xff]  ;;  %v97_v28 = vld [vmem:[%s975_s1 + $0x1a0] sm:$0xff]  ;;  %v67_v36 = vld [vmem:[%s975_s1 + $0xb0] sm:$0xff] }
   0x8   :  { %606 = vmatpush3.bf16.msra.mxu1 %v605_v13  ;;  %576 = vmatprep.subr.bf16.mxu0 %v575_v17  ;;  %v98_v29 = vld [vmem:[%s975_s1 + $0x1a8] sm:$0xff]  ;;  %v579_v30 = vpack.c.bf16 %v66_v27, %v65_v25  ;;  %v49_v32 = vld [vmem:[%s975_s1 + $0x20] sm:$0xff]  ;;  %v68_v37 = vld [vmem:[%s975_s1 + $0xb8] sm:$0xff] }
   0x9   :  { %608 = vmatprep.subr.bf16.mxu1 %v607_v21  ;;  %v611_v31 = vpack.c.bf16 %v98_v29, %v97_v28  ;;  %v50_v33 = vld [vmem:[%s975_s1 + $0x28] sm:$0xff]  ;;  %v81_v34 = vld [vmem:[%s975_s1 + $0x120] sm:$0xff]  ;;  %v99_v40 = vld [vmem:[%s975_s1 + $0x1b0] sm:$0xff]  ;;  %v583_v43 = vpack.c.bf16 %v68_v37, %v67_v36 }
   0xa   :  { %v82_v35 = vld [vmem:[%s975_s1 + $0x128] sm:$0xff]  ;;  %v581_v38 = vpack.c.bf16 %v50_v33, %v49_v32  ;;  %v100_v41 = vld [vmem:[%s975_s1 + $0x1b8] sm:$0xff]  ;;  %v51_v42 = vld [vmem:[%s975_s1 + $0x30] sm:$0xff] }
   0xb   :  { %578 = vmatpush3.bf16.msra.mxu0 %v577_v22  ;;  %v613_v39 = vpack.c.bf16 %v82_v35, %v81_v34  ;;  %v615_v44 = vpack.c.bf16 %v100_v41, %v99_v40  ;;  %v52_v45 = vld [vmem:[%s975_s1 + $0x38] sm:$0xff]  ;;  %v83_v46 = vld [vmem:[%s975_s1 + $0x130] sm:$0xff]  ;;  %v69_v48 = vld [vmem:[%s975_s1 + $0xc0] sm:$0xff] }
   0xc   :  { %610 = vmatpush3.bf16.msra.mxu1 %v609_v26  ;;  %580 = vmatprep.subr.bf16.mxu0 %v579_v30  ;;  %v84_v47 = vld [vmem:[%s975_s1 + $0x138] sm:$0xff]  ;;  %v70_v49 = vld [vmem:[%s975_s1 + $0xc8] sm:$0xff]  ;;  %v101_v50 = vld [vmem:[%s975_s1 + $0x1c0] sm:$0xff]  ;;  %v585_v52 = vpack.c.bf16 %v52_v45, %v51_v42 }
   0xd   :  { %612 = vmatprep.subr.bf16.mxu1 %v611_v31  ;;  %v102_v51 = vld [vmem:[%s975_s1 + $0x1c8] sm:$0xff]  ;;  %v617_v53 = vpack.c.bf16 %v84_v47, %v83_v46  ;;  %v53_v54 = vld [vmem:[%s975_s1 + $0x40] sm:$0xff]  ;;  %v587_v56 = vpack.c.bf16 %v70_v49, %v69_v48  ;;  %v71_v60 = vld [vmem:[%s975_s1 + $0xd0] sm:$0xff] }
   0xe   :  { %v54_v55 = vld [vmem:[%s975_s1 + $0x48] sm:$0xff]  ;;  %v619_v57 = vpack.c.bf16 %v102_v51, %v101_v50  ;;  %v85_v58 = vld [vmem:[%s975_s1 + $0x140] sm:$0xff]  ;;  %v72_v61 = vld [vmem:[%s975_s1 + $0xd8] sm:$0xff] }
   0xf   :  { %582 = vmatpush3.bf16.msra.mxu0 %v581_v38  ;;  %v86_v59 = vld [vmem:[%s975_s1 + $0x148] sm:$0xff]  ;;  %v103_v62 = vld [vmem:[%s975_s1 + $0x1d0] sm:$0xff]  ;;  %v104_v63 = vld [vmem:[%s975_s1 + $0x1d8] sm:$0xff]  ;;  %v589_v0 = vpack.c.bf16 %v54_v55, %v53_v54  ;;  %v591_v4 = vpack.c.bf16 %v72_v61, %v71_v60 }
  0x10   :  { %614 = vmatpush3.bf16.msra.mxu1 %v613_v39  ;;  %584 = vmatprep.subr.bf16.mxu0 %v583_v43  ;;  %v621_v1 = vpack.c.bf16 %v86_v59, %v85_v58  ;;  %v55_v2 = vld [vmem:[%s975_s1 + $0x50] sm:$0xff]  ;;  %v56_v3 = vld [vmem:[%s975_s1 + $0x58] sm:$0xff]  ;;  %v623_v5 = vpack.c.bf16 %v104_v63, %v103_v62  ;;  %v73_v8 = vld [vmem:[%s975_s1 + $0xe0] sm:$0xff] }
  0x11   :  { %616 = vmatprep.subr.bf16.mxu1 %v615_v44  ;;  %v87_v6 = vld [vmem:[%s975_s1 + $0x150] sm:$0xff]  ;;  %v88_v7 = vld [vmem:[%s975_s1 + $0x158] sm:$0xff]  ;;  %v74_v9 = vld [vmem:[%s975_s1 + $0xe8] sm:$0xff]  ;;  %v593_v12 = vpack.c.bf16 %v56_v3, %v55_v2 }
  0x12   :  { %v105_v10 = vld [vmem:[%s975_s1 + $0x1e0] sm:$0xff]  ;;  %v106_v11 = vld [vmem:[%s975_s1 + $0x1e8] sm:$0xff]  ;;  %v625_v13 = vpack.c.bf16 %v88_v7, %v87_v6 }
  0x13   :  { %586 = vmatpush3.bf16.msra.mxu0 %v585_v52  ;;  %v57_v14 = vld [vmem:[%s975_s1 + $0x60] sm:$0xff]  ;;  %v58_v15 = vld [vmem:[%s975_s1 + $0x68] sm:$0xff] }
  0x14   :  { %618 = vmatpush3.bf16.msra.mxu1 %v617_v53  ;;  %588 = vmatprep.subr.bf16.mxu0 %v587_v56 }
  0x15   :  { %620 = vmatprep.subr.bf16.mxu1 %v619_v57 }
  0x17   :  { %590 = vmatpush3.bf16.msra.mxu0 %v589_v0 }
  0x18   :  { %622 = vmatpush3.bf16.msra.mxu1 %v621_v1 }
  0x19   :  { %11 = vsyncpa [#allocation3], 0  ;;  %592 = vmatprep.subr.bf16.mxu0 %v591_v4  ;;  %624 = vmatprep.subr.bf16.mxu1 %v623_v5  ;;  %v595_v16 = vpack.c.bf16 %v74_v9, %v73_v8  ;;  %v627_v17 = vpack.c.bf16 %v106_v11, %v105_v10  ;;  %v89_v18 = vld [vmem:[%s975_s1 + $0x160] sm:$0xff]  ;;  %v90_v19 = vld [vmem:[%s975_s1 + $0x168] sm:$0xff]  ;;  %v597_v24 = vpack.c.bf16 %v58_v15, %v57_v14  ;;  %v25_v34 = vlaneseq  ;;  %s689_s26 = smov [#allocation2]  }
  0x1a   :  { %v75_v20 = vld [vmem:[%s975_s1 + $0xf0] sm:$0xff]  ;;  %v76_v21 = vld [vmem:[%s975_s1 + $0xf8] sm:$0xff]  ;;  %v629_v25 = vpack.c.bf16 %v90_v19, %v89_v18  ;;  %v685_v40 = vmov 1.0   ;;  %v252_v41 = vld [vmem:[%s976_s2] sm:$0xff]  ;;  %v686_v44 = vmov 0.0|0.0   ;;  %vm687_vm4 = vmmov 0  }
  0x1b   :  { %v107_v22 = vld [vmem:[%s975_s1 + $0x1f0] sm:$0xff]  ;;  %v108_v23 = vld [vmem:[%s975_s1 + $0x1f8] sm:$0xff]  ;;  %594 = vmatpush3.bf16.msra.mxu0 %v593_v12  ;;  %v599_v27 = vpack.c.bf16 %v76_v21, %v75_v20  ;;  %v26_v35 = vand.u32 127, %v25_v34  ;;  %v253_v42 = vld [vmem:[%s976_s2 + $0x8] sm:$0xff]  ;;  %v688_v48 = vmov 0.0   ;;  %vm263_vm6 = vcmask 261120  }
  0x1c   :  { %626 = vmatpush3.bf16.msra.mxu1 %v625_v13  ;;  %v59_v26 = vld [vmem:[%s975_s1 + $0x70] sm:$0xff]  ;;  %596 = vmatprep.subr.bf16.mxu0 %v595_v16  ;;  %v631_v28 = vpack.c.bf16 %v108_v23, %v107_v22  ;;  %v60_v29 = vld [vmem:[%s975_s1 + $0x78] sm:$0xff]  ;;  %v636_v43 = vpack.c.bf16 %v253_v42, %v252_v41  ;;  %v340_v49 = vld [vmem:[%s978_s4] sm:$0xff]  ;;  %vm355_vm8 = vcmask 523264   ;;  %vm429_vm9 = vcmask 48128  }
  0x1d   :  { %628 = vmatprep.subr.bf16.mxu1 %v627_v17  ;;  %v91_v30 = vld [vmem:[%s975_s1 + $0x170] sm:$0xff]  ;;  %v92_v31 = vld [vmem:[%s975_s1 + $0x178] sm:$0xff]  ;;  %v601_v32 = vpack.c.bf16 %v60_v29, %v59_v26  ;;  %v27_v36 = vadd.s32 128, %v26_v35  ;;  %v29_v37 = vadd.s32 384, %v26_v35  ;;  %v28_v38 = vadd.s32 256, %v26_v35  ;;  %v341_v50 = vld [vmem:[%s978_s4 + $0x8] sm:$0xff] }
  0x1e   :  { %v633_v33 = vpack.c.bf16 %v92_v31, %v91_v30  ;;  %v254_v45 = vld [vmem:[%s976_s2 + $0x10] sm:$0xff]  ;;  %v255_v46 = vld [vmem:[%s976_s2 + $0x18] sm:$0xff]  ;;  %v642_v52 = vpack.c.bf16 %v341_v50, %v340_v49  ;;  %v344_v55 = vld [vmem:[%s978_s4 + $0x20] sm:$0xff] }
  0x1f   :  { %598 = vmatpush3.bf16.msra.mxu0 %v597_v24  ;;  %v639_v47 = vpack.c.bf16 %v255_v46, %v254_v45  ;;  %v342_v51 = vld [vmem:[%s978_s4 + $0x10] sm:$0xff]  ;;  %v343_v53 = vld [vmem:[%s978_s4 + $0x18] sm:$0xff]  ;;  %v345_v56 = vld [vmem:[%s978_s4 + $0x28] sm:$0xff] }
  0x20   :  { %630 = vmatpush3.bf16.msra.mxu1 %v629_v25  ;;  %600 = vmatprep.subr.bf16.mxu0 %v599_v27  ;;  %v645_v54 = vpack.c.bf16 %v343_v53, %v342_v51  ;;  %v648_v57 = vpack.c.bf16 %v345_v56, %v344_v55  ;;  %v346_v3 = vld [vmem:[%s978_s4 + $0x30] sm:$0xff]  ;;  %v347_v4 = vld [vmem:[%s978_s4 + $0x38] sm:$0xff]  ;;  %v453_v6 = vld [vmem:[%s977_s3] ss:$0 sm:$0xff]  ;;  %s437_s4 = sshll.u32 %s689_s26, 4  ;;  %s438_s4 = int_to_ptr.vmem [resolvable:$true] %s437_s4 }
  0x21   :  { %632 = vmatprep.subr.bf16.mxu1 %v631_v28  ;;  %v651_v5 = vpack.c.bf16 %v347_v4, %v346_v3  ;;  %v455_v12 = vld [vmem:[%s979_s5] ss:$0 sm:$0xff]  ;;  %s660_s3 = scalar_lea.vmem %s438_s4, 128  ;;  %p665_p1 = scmp.lt.s32.totalorder %s438_s4, %s438_s4 }
  0x22   :  { %p661_p0 = scmp.ne.s32.totalorder %s438_s4, %s660_s3  ;;  %p666_p2 = scmp.lt.s32.totalorder %s660_s3, %s660_s3 }
  0x23   :  { %602 = vmatpush3.bf16.msra.mxu0 %v601_v32 }
  0x24   :  { %634 = vmatpush3.bf16.msra.mxu1 %v633_v33  ;;  %635 = vmatprep.subr.bf16.mxu0 %v686_v44  ;;  %p667_p3 = por %p666_p2, %p665_p1 }
  0x25   :  { %641 = vmatprep.subr.bf16.mxu1 %v686_v44 }
  0x26   :  { %p668_p4 = pnand %p667_p3, %p661_p0 }
  0x81   :  { %v32_v39 = vpop.permute.xlu0 %31 }
  0x82   :  { %vm34_vm0 = vcmp.eq.s32.totalorder %v27_v36, %v32_v39  ;;  %vm36_vm1 = vcmp.eq.s32.totalorder %v29_v37, %v32_v39  ;;  %vm33_vm2 = vcmp.eq.s32.totalorder %v26_v35, %v32_v39  ;;  %vm35_vm3 = vcmp.eq.s32.totalorder %v28_v38, %v32_v39 }
  0x83   :  { %449 = vmatprep.mubr.msk.f32.mxu0 %vm34_vm0, %v685_v40  ;;  %451 = vmatprep.mubr.msk.f32.mxu1 %vm36_vm1, %v685_v40 }
  0x84   :  { %450 = vmatmul.mubr.msk.f32.vlgmr.msra.gmra.mrb[0].mxu0 %vm33_vm2, %v685_v40  ;;  %452 = vmatmul.mubr.msk.f32.vlgmr.msra.gmra.mrb[0].mxu1 %vm35_vm3, %v685_v40 }
  0x85   :  { %637 = vmatpush3.bf16.msra.mxu0 %v636_v43  ;;  %549 = vmatprep.mubr.msk.f32.mxu0 %vm687_vm4, %v688_v48 }
  0x86   :  { %638 = vmatprep.subr.bf16.mxu0 %v686_v44  ;;  %568 = vmatprep.mubr.msk.f32.mxu1 %vm687_vm4, %v688_v48 }
  0x87   :  { %643 = vmatpush3.bf16.msra.mxu1 %v642_v52 }
  0x88   :  { %644 = vmatprep.subr.bf16.mxu1 %v686_v44 }
  0x89   :  { %640 = vmatpush3.bf16.msra.mxu0 %v639_v47 }
  0x8b   :  { %646 = vmatpush3.bf16.msra.mxu1 %v645_v54 }
  0x8c   :  { %647 = vmatprep.subr.bf16.mxu1 %v686_v44 }
  0x8f   :  { %649 = vmatpush3.bf16.msra.mxu1 %v648_v57 }
  0x90   :  { %650 = vmatprep.subr.bf16.mxu1 %v686_v44 }
  0x93   :  { %652 = vmatpush3.bf16.msra.mxu1 %v651_v5 }
 0x157   :  { %v489_v58 = vpop.f32.mrb[0].mxu0  ;;  %v524_v59 = vpop.f32.mrb[0].mxu1 }
 0x158   :  { %v490_v60 = vpop.f32.mrb[1].mxu0  ;;  %v525_v61 = vpop.f32.mrb[1].mxu1 }
 0x159   :  { %v491_v62 = vadd.f32 %v490_v60, %v489_v58  ;;  %v526_v63 = vadd.f32 %v525_v61, %v524_v59 }
 0x15b   :  { %v246_v0 = vadd.f32 %v526_v63, %v491_v62 }
 0x15d   :  { %vm249_vm5 = vcmp.gt.f32.partialorder %v246_v0, 0.0  ;;  %v250_v1 = vmul.f32 0.01, %v246_v0 }
 0x15f   :  { %v251_v2 = vsel %vm249_vm5, %v246_v0, %v250_v1 }
 0x160   :  { %550 = vmatmul.mubr.msk.f32.vlgmr.msra.gmra.mrb[2].mxu0 %vm263_vm6, %v251_v2 }
 0x233   :  { %v333_v7 = vpop.f32.mrb[2].mxu0 }
 0x234   :  { %v334_v8 = vadd.f32 %v453_v6, %v333_v7  ;;  %v551_v9 = vpop.f32.mrb[3].mxu0 }
 0x236   :  { %vm337_vm7 = vcmp.gt.f32.partialorder %v334_v8, 0.0  ;;  %v338_v10 = vmul.f32 0.01, %v334_v8 }
 0x238   :  { %v339_v11 = vsel %vm337_vm7, %v334_v8, %v338_v10 }
 0x239   :  { %569 = vmatmul.mubr.msk.f32.vlgmr.msra.gmra.mrb[2].mxu1 %vm355_vm8, %v339_v11 }
 0x30c   :  { %v425_v13 = vpop.f32.mrb[2].mxu1 }
 0x30d   :  { %v426_v14 = vadd.f32 %v455_v12, %v425_v13  ;;  %v570_v15 = vpop.f32.mrb[3].mxu1 }
 0x30f   :  { %430 = vst.msk [vmem:[#allocation2] sm:$0xff] %vm429_vm9, %v426_v14 }
 0x310   :  { %671 = shalt.err (!%p668_p4)
}
 0x311   :  { %s672_s29 = scalar_lea.hbm %s980_s6, 128 }
 0x312   :  { %p673_p5 = scmp.ne.s32.totalorder %s980_s6, %s672_s29  ;;  %p676_p6 = scmp.lt.u32.totalorder %s672_s29, %s980_s6 }
 0x314   :  { %p678_p7 = pnand %p676_p6, %p673_p5 }
 0x316   :  { %681 = shalt.err (!%p678_p7)
}
 0x317   :  { %440 = dma.vmem_to_hbm [thread:$0]  %s438_s4, 128, %s980_s6, [#allocation3]  }
 0x318   :  { %682 = dma.done.wait [#allocation3], 128  }
 0x319   :  { %683 = vsyncadd [#allocation3], 4294967168 }
 0x31a   :  { %444 = vsyncpa [#allocation3], 1 }

</bundles_post_ra>
